<compile_context>
chip_gen: v7x
topology: tpu7x:2x2x1
jax: 0.10.0
libtpu: 0.0.40
codegen_flags: <defaults>
</compile_context>

<pallas_src>
import math

import jax
import jax.numpy as jnp
from jax.experimental import pallas as pl
from jax.experimental.pallas import tpu as pltpu


# ----------------------------------------------------------------------------
# Small helpers
# ----------------------------------------------------------------------------
def _round_up(x: int, m: int) -> int:
    return ((x + m - 1) // m) * m


def _pick_tile(dim: int, max_tile: int, quantum: int) -> int:
    """Largest multiple of `quantum` that divides `dim` and is <= max_tile.

    Falls back to the full dim (a full-extent block is always layout-legal).
    """
    if dim <= quantum or dim % quantum != 0:
        return dim
    best = quantum
    t = quantum
    lim = min(max_tile, dim)
    while t <= lim:
        if dim % t == 0:
            best = t
        t += quantum
    return best


def _vmem_cap() -> int:
    """Per-generation safe VMEM budget (leave headroom for compiler scratch)."""
    try:
        phys = int(pltpu.get_tpu_info().vmem_capacity_bytes)
    except Exception:
        phys = 128 << 20
    # ~52 MiB on v7x (64 MiB physical), ~100 MiB on v5e/v6e (128 MiB physical).
    return int(max(min(phys - (12 << 20), 100 << 20), 24 << 20))


# ----------------------------------------------------------------------------
# Kernels
# ----------------------------------------------------------------------------
def _swiglu_kernel(x_ref, w12_ref, wo_ref, o_ref, acc_ref):
    """One (i, h) grid step of out = (silu(x@Wsilu) * (x@Wgate)) @ Wout.

    x_ref   : (tm, Din)      bf16
    w12_ref : (2, Din, th)   bf16   [0] = Wsilu tile, [1] = Wgate tile
    wo_ref  : (th, Np)       bf16   full (padded) output width
    o_ref   : (tm, Np)       bf16   written on the last h step
    acc_ref : (tm, Np)       f32    persists across the h reduction axis
    """
    h = pl.program_id(1)

    @pl.when(h == 0)
    def _():
        acc_ref[...] = jnp.zeros_like(acc_ref)

    x = x_ref[...]
    # Two MXU passes over the VMEM-resident x block; one fused weight DMA.
    h_silu = jnp.dot(x, w12_ref[0], preferred_element_type=jnp.float32)
    h_gate = jnp.dot(x, w12_ref[1], preferred_element_type=jnp.float32)
    # Gating stays f32 on the VPU/EUP (v5e has no bf16 VPU/EUP path).
    gated = h_silu * jax.nn.sigmoid(h_silu) * h_gate
    acc_ref[...] += jnp.dot(
        gated.astype(wo_ref.dtype), wo_ref[...],
        preferred_element_type=jnp.float32)

    @pl.when(h == pl.num_programs(1) - 1)
    def _():
        o_ref[...] = acc_ref[...].astype(o_ref.dtype)


def _linear_kernel(x_ref, w_ref, b_ref, o_ref, acc_ref):
    """One (i, j, k) grid step of out = x @ W + b (K-tiled reduction)."""
    k = pl.program_id(2)

    @pl.when(k == 0)
    def _():
        acc_ref[...] = jnp.zeros_like(acc_ref)

    acc_ref[...] += jnp.dot(
        x_ref[...], w_ref[...], preferred_element_type=jnp.float32)

    @pl.when(k == pl.num_programs(2) - 1)
    def _():
        o_ref[...] = (acc_ref[...] + b_ref[...]).astype(o_ref.dtype)


# ----------------------------------------------------------------------------
# Layer wrappers (expect pre-padded bf16 weights and a padded-M activation)
# ----------------------------------------------------------------------------
def swiglu_layer(x, w12, w_out, *, tm=256, th=256):
    """x: [Mp, Din] bf16, w12: [2, Din, Hp] bf16, w_out: [Hp, Np] bf16
    -> [Mp, Np] bf16 (padded)."""
    Mp, Din = x.shape
    Hp = w12.shape[2]
    Np = w_out.shape[1]

    tm_e = _pick_tile(Mp, tm, 16)
    th_e = _pick_tile(Hp, th, 128)

    cap = _vmem_cap()

    def need(tm_, th_):
        # double-buffered bf16 in/out blocks + f32 accumulator + slack
        return (2 * (tm_ * Din + 2 * Din * th_ + th_ * Np + tm_ * Np) * 2
                + tm_ * Np * 4 + (2 << 20))

    while need(tm_e, th_e) > cap and th_e > 128:
        nxt = _pick_tile(Hp, th_e - 128, 128)
        if nxt >= th_e:
            break
        th_e = nxt
    while need(tm_e, th_e) > cap and tm_e > 16:
        nxt = _pick_tile(Mp, tm_e - 16, 16)
        if nxt >= tm_e:
            break
        tm_e = nxt

    grid = (Mp // tm_e, Hp // th_e)

    cost = pl.CostEstimate(
        flops=int(2 * Mp * Din * 2 * Hp + 2 * Mp * Hp * Np + 4 * Mp * Hp),
        transcendentals=int(Mp * Hp),
        bytes_accessed=int(Mp * Din * 2
                           + grid[0] * (w12.size + w_out.size) * 2
                           + Mp * Np * 2),
    )

    return pl.pallas_call(
        _swiglu_kernel,
        out_shape=jax.ShapeDtypeStruct((Mp, Np), jnp.bfloat16),
        grid_spec=pltpu.PrefetchScalarGridSpec(
            num_scalar_prefetch=0,
            grid=grid,
            in_specs=[
                pl.BlockSpec((tm_e, Din), lambda i, h: (i, 0)),
                pl.BlockSpec((2, Din, th_e), lambda i, h: (0, 0, h)),
                pl.BlockSpec((th_e, Np), lambda i, h: (h, 0)),
            ],
            out_specs=pl.BlockSpec((tm_e, Np), lambda i, h: (i, 0)),
            scratch_shapes=[pltpu.VMEM((tm_e, Np), jnp.float32)],
        ),
        compiler_params=pltpu.CompilerParams(
            dimension_semantics=("parallel", "arbitrary"),
            vmem_limit_bytes=int(min(max(need(tm_e, th_e), 32 << 20), cap)),
        ),
        cost_estimate=cost,
    )(x, w12, w_out)


def linear_layer(x, w, b, *, tm=256, tn=512, tk=512, out_dtype=jnp.float32):
    """x: [Mp, Kp] bf16, w: [Kp, Np] bf16, b: [1, Np] f32 -> [Mp, Np] f32."""
    Mp, Kp = x.shape
    Np = w.shape[1]

    tm_e = _pick_tile(Mp, tm, 16)
    tn_e = _pick_tile(Np, tn, 128)
    tk_e = _pick_tile(Kp, tk, 128)

    cap = _vmem_cap()

    def need(tm_, tn_, tk_):
        return (2 * (tm_ * tk_ * 2 + tk_ * tn_ * 2 + tn_ * 4 + tm_ * tn_ * 4)
                + tm_ * tn_ * 4 + (2 << 20))

    while need(tm_e, tn_e, tk_e) > cap and tk_e > 128:
        nxt = _pick_tile(Kp, tk_e - 128, 128)
        if nxt >= tk_e:
            break
        tk_e = nxt

    grid = (Mp // tm_e, Np // tn_e, Kp // tk_e)

    cost = pl.CostEstimate(
        flops=int(2 * Mp * Kp * Np + Mp * Np),
        transcendentals=0,
        bytes_accessed=int(Mp * Kp * 2 + grid[0] * (w.size * 2 + b.size * 4)
                           + Mp * Np * 4),
    )

    return pl.pallas_call(
        _linear_kernel,
        out_shape=jax.ShapeDtypeStruct((Mp, Np), out_dtype),
        grid_spec=pltpu.PrefetchScalarGridSpec(
            num_scalar_prefetch=0,
            grid=grid,
            in_specs=[
                pl.BlockSpec((tm_e, tk_e), lambda i, j, k: (i, k)),
                pl.BlockSpec((tk_e, tn_e), lambda i, j, k: (k, j)),
                pl.BlockSpec((1, tn_e), lambda i, j, k: (0, j)),
            ],
            out_specs=pl.BlockSpec((tm_e, tn_e), lambda i, j, k: (i, j)),
            scratch_shapes=[pltpu.VMEM((tm_e, tn_e), jnp.float32)],
        ),
        compiler_params=pltpu.CompilerParams(
            dimension_semantics=("parallel", "parallel", "arbitrary"),
            vmem_limit_bytes=int(min(max(need(tm_e, tn_e, tk_e), 32 << 20),
                                     cap)),
        ),
        cost_estimate=cost,
    )(x, w, b)


# ----------------------------------------------------------------------------
# Parameter init: mirrors nn.Linear U(-1/sqrt(fan_in), 1/sqrt(fan_in)).
# Weights are padded (lanes to multiples of 128, inter-layer Din to the
# previous layer's padded width) and cast to bf16 ONCE here.
# ----------------------------------------------------------------------------
def _init_linear_weight(key, fan_in, fan_out):
    bound = 1.0 / math.sqrt(fan_in)
    # stored as [in, out] (transposed vs PyTorch [out, in])
    return jax.random.uniform(
        key, (fan_in, fan_out), dtype=jnp.float32, minval=-bound, maxval=bound)


def init_swiglu_mlp_params(key, input_size, hidden_sizes, output_size):
    swiglu_params = []
    prev, prev_p = input_size, input_size     # actual / padded feature widths
    for hs in hidden_sizes:
        hidden = int(hs * 2)
        Hp = _round_up(hidden, 128)
        Np = _round_up(hs, 128)
        key, k1, k2, k3 = jax.random.split(key, 4)
        w_silu = _init_linear_weight(k1, prev, hidden)
        w_gate = _init_linear_weight(k2, prev, hidden)
        w_out = _init_linear_weight(k3, hidden, hs)
        # packed [2, Din_p, Hp]: one BlockSpec / one weight DMA stream for
        # both gate matmuls inside the kernel.  Zero padding is exact:
        # silu(0)*0 == 0 and zero rows/cols contribute nothing.
        w12 = jnp.stack([w_silu, w_gate])
        w12 = jnp.pad(w12, ((0, 0), (0, prev_p - prev), (0, Hp - hidden)))
        w_out = jnp.pad(w_out, ((0, Hp - hidden), (0, Np - hs)))
        swiglu_params.append(dict(
            w12=w12.astype(jnp.bfloat16),
            w_out=w_out.astype(jnp.bfloat16),
        ))
        prev, prev_p = hs, Np

    key, kw, kb = jax.random.split(key, 3)
    Np = _round_up(output_size, 128)
    bound = 1.0 / math.sqrt(prev)
    w = _init_linear_weight(kw, prev, output_size)
    b = jax.random.uniform(kb, (1, output_size), dtype=jnp.float32,
                           minval=-bound, maxval=bound)
    final_params = dict(
        w=jnp.pad(w, ((0, prev_p - prev), (0, Np - output_size))
                  ).astype(jnp.bfloat16),
        b=jnp.pad(b, ((0, 0), (0, Np - output_size))),
    )
    return swiglu_params, final_params


def swiglu_mlp_forward(x, swiglu_params, final_params, output_size):
    """x: [M, input_size] -> [M, output_size] f32."""
    M = x.shape[0]
    Mp = _round_up(M, 16)                         # bf16 packs 16 rows / vreg
    h = jnp.pad(x.astype(jnp.bfloat16), ((0, Mp - M), (0, 0)))
    # Activations stay padded + bf16 between layers; slice once at the end.
    for p in swiglu_params:
        h = swiglu_layer(h, p["w12"], p["w_out"])
    out = linear_layer(h, final_params["w"], final_params["b"])
    return out[:M, :output_size]


# ----------------------------------------------------------------------------
# Pure-JAX f32 reference (uses the same padded bf16 weights; padding is zeros
# so the valid region matches the unpadded computation exactly).
# ----------------------------------------------------------------------------
def swiglu_mlp_reference(x, swiglu_params, final_params, output_size):
    h = x.astype(jnp.float32)
    for p in swiglu_params:
        w12 = p["w12"].astype(jnp.float32)
        wo = p["w_out"].astype(jnp.float32)
        a = h @ w12[0]
        g = h @ w12[1]
        h = (a * jax.nn.sigmoid(a) * g) @ wo
    out = h @ final_params["w"].astype(jnp.float32) + final_params["b"]
    return out[:, :output_size]


if __name__ == "__main__":
    key = jax.random.PRNGKey(0)
    key, pkey, xkey = jax.random.split(key, 3)

    batch = 8
    input_size = 16
    hidden_sizes = [32, 16]
    output_size = 4

    swiglu_params, final_params = init_swiglu_mlp_params(
        pkey, input_size, hidden_sizes, output_size)
    x = jax.random.normal(xkey, (batch, input_size), dtype=jnp.float32)

    fwd = jax.jit(swiglu_mlp_forward, static_argnums=(3,))
    out = fwd(x, swiglu_params, final_params, output_size)
    out = jax.block_until_ready(out)

    ref = swiglu_mlp_reference(x, swiglu_params, final_params, output_size)
    assert out.shape == (batch, output_size)
    assert out.dtype == jnp.float32
    # bf16 MXU inputs / bf16 inter-layer activations => relaxed tolerance.
    assert jnp.allclose(out, ref, atol=5e-2, rtol=5e-2), "mismatch vs reference"

    print("KERNEL_OK")
</pallas_src>

<mosaic_0001>
module attributes {stable_mosaic.version = 11 : i64} {
  func.func @_linear_kernel(%arg0: i32, %arg1: i32, %arg2: i32, %arg3: memref<16x128xbf16, #tpu.memory_space<vmem>>, %arg4: memref<128x128xbf16, #tpu.memory_space<vmem>>, %arg5: memref<1x128xf32, #tpu.memory_space<vmem>>, %arg6: memref<16x128xf32, #tpu.memory_space<vmem>>, %arg7: memref<16x128xf32, #tpu.memory_space<vmem>>) attributes {dimension_semantics = [#tpu.dimension_semantics<parallel>, #tpu.dimension_semantics<parallel>, #tpu.dimension_semantics<arbitrary>], iteration_bounds = array<i64: 1, 1, 1>, scalar_prefetch = 0 : i64, scratch_operands = 1 : i64, tpu.core_type = #tpu.core_type<tc>, window_params = [{transform_indices = @transform_0, window_bounds = array<i64: 16, 128>}, {transform_indices = @transform_1, window_bounds = array<i64: 128, 128>}, {transform_indices = @transform_2, window_bounds = array<i64: 1, 128>}, {transform_indices = @transform_3, window_bounds = array<i64: 16, 128>}]} {
    %c0_i32 = arith.constant 0 : i32
    %0 = arith.cmpi eq, %arg2, %c0_i32 : i32
    %1 = arith.extui %0 : i1 to i32
    %c0_i32_0 = arith.constant 0 : i32
    %2 = arith.cmpi ne, %1, %c0_i32_0 : i32
    scf.if %2 {
      %cst_10 = arith.constant 0.000000e+00 : f32
      %12 = vector.broadcast %cst_10 : f32 to vector<16x128xf32>
      %c0_11 = arith.constant 0 : index
      %c0_12 = arith.constant 0 : index
      %13 = vector.load %arg7[%c0_11, %c0_12] : memref<16x128xf32, #tpu.memory_space<vmem>>, vector<16x128xf32>
      tpu.vector_store %arg7[%c0_11, %c0_12], %12 {strides = array<i32>} : memref<16x128xf32, #tpu.memory_space<vmem>>, vector<16x128xf32>,
    } else {
    }
    %c0 = arith.constant 0 : index
    %c0_1 = arith.constant 0 : index
    %3 = vector.load %arg7[%c0, %c0_1] : memref<16x128xf32, #tpu.memory_space<vmem>>, vector<16x128xf32>
    %c0_2 = arith.constant 0 : index
    %c0_3 = arith.constant 0 : index
    %4 = vector.load %arg3[%c0_2, %c0_3] : memref<16x128xbf16, #tpu.memory_space<vmem>>, vector<16x128xbf16>
    %c0_4 = arith.constant 0 : index
    %c0_5 = arith.constant 0 : index
    %5 = vector.load %arg4[%c0_4, %c0_5] : memref<128x128xbf16, #tpu.memory_space<vmem>>, vector<128x128xbf16>
    %cst = arith.constant dense<0.000000e+00> : vector<16x128xf32>
    %6 = tpu.matmul %4, %5, %cst {dimension_numbers = #tpu.dot_dimension_numbers<[1], [0], [0], [1], [0, 0, 1, 1], [], []>} : vector<16x128xbf16>, vector<128x128xbf16>, vector<16x128xf32> -> vector<16x128xf32>
    %7 = arith.addf %3, %6 : vector<16x128xf32>
    %c0_6 = arith.constant 0 : index
    %c0_7 = arith.constant 0 : index
    %8 = vector.load %arg7[%c0_6, %c0_7] : memref<16x128xf32, #tpu.memory_space<vmem>>, vector<16x128xf32>
    tpu.vector_store %arg7[%c0_6, %c0_7], %7 {strides = array<i32>} : memref<16x128xf32, #tpu.memory_space<vmem>>, vector<16x128xf32>,
    %c0_i32_8 = arith.constant 0 : i32
    %9 = arith.cmpi eq, %arg2, %c0_i32_8 : i32
    %10 = arith.extui %9 : i1 to i32
    %c0_i32_9 = arith.constant 0 : i32
    %11 = arith.cmpi ne, %10, %c0_i32_9 : i32
    scf.if %11 {
      %c0_10 = arith.constant 0 : index
      %c0_11 = arith.constant 0 : index
      %12 = vector.load %arg7[%c0_10, %c0_11] : memref<16x128xf32, #tpu.memory_space<vmem>>, vector<16x128xf32>
      %c0_12 = arith.constant 0 : index
      %c0_13 = arith.constant 0 : index
      %13 = vector.load %arg5[%c0_12, %c0_13] : memref<1x128xf32, #tpu.memory_space<vmem>>, vector<1x128xf32>
      %14 = vector.broadcast %13 : vector<1x128xf32> to vector<16x128xf32>
      %15 = arith.addf %12, %14 : vector<16x128xf32>
      %c0_14 = arith.constant 0 : index
      %c0_15 = arith.constant 0 : index
      %16 = vector.load %arg6[%c0_14, %c0_15] : memref<16x128xf32, #tpu.memory_space<vmem>>, vector<16x128xf32>
      tpu.vector_store %arg6[%c0_14, %c0_15], %15 {strides = array<i32>} : memref<16x128xf32, #tpu.memory_space<vmem>>, vector<16x128xf32>,
    } else {
    }
    return
  }
  func.func @transform_0(%arg0: i32, %arg1: i32, %arg2: i32) -> (i32, i32) {
    %c0_i32 = arith.constant 0 : i32
    return %arg0, %arg2 : i32, i32
  }
  func.func @transform_1(%arg0: i32, %arg1: i32, %arg2: i32) -> (i32, i32) {
    %c0_i32 = arith.constant 0 : i32
    return %arg2, %arg1 : i32, i32
  }
  func.func @transform_2(%arg0: i32, %arg1: i32, %arg2: i32) -> (i32, i32) {
    %c0_i32 = arith.constant 0 : i32
    %c0_i32_0 = arith.constant 0 : i32
    return %c0_i32, %arg1 : i32, i32
  }
  func.func @transform_3(%arg0: i32, %arg1: i32, %arg2: i32) -> (i32, i32) {
    %c0_i32 = arith.constant 0 : i32
    return %arg0, %arg1 : i32, i32
  }
}

module attributes {stable_mosaic.version = 11 : i64} {
  func.func @_swiglu_kernel(%arg0: i32, %arg1: i32, %arg2: memref<16x16xbf16, #tpu.memory_space<vmem>>, %arg3: memref<2x16x128xbf16, #tpu.memory_space<vmem>>, %arg4: memref<128x128xbf16, #tpu.memory_space<vmem>>, %arg5: memref<16x128xbf16, #tpu.memory_space<vmem>>, %arg6: memref<16x128xf32, #tpu.memory_space<vmem>>) attributes {dimension_semantics = [#tpu.dimension_semantics<parallel>, #tpu.dimension_semantics<arbitrary>], iteration_bounds = array<i64: 1, 1>, scalar_prefetch = 0 : i64, scratch_operands = 1 : i64, tpu.core_type = #tpu.core_type<tc>, window_params = [{transform_indices = @transform_0, window_bounds = array<i64: 16, 16>}, {transform_indices = @transform_1, window_bounds = array<i64: 2, 16, 128>}, {transform_indices = @transform_2, window_bounds = array<i64: 128, 128>}, {transform_indices = @transform_3, window_bounds = array<i64: 16, 128>}]} {
    %c0_i32 = arith.constant 0 : i32
    %0 = arith.cmpi eq, %arg1, %c0_i32 : i32
    %1 = arith.extui %0 : i1 to i32
    %c0_i32_0 = arith.constant 0 : i32
    %2 = arith.cmpi ne, %1, %c0_i32_0 : i32
    scf.if %2 {
      %cst_18 = arith.constant 0.000000e+00 : f32
      %26 = vector.broadcast %cst_18 : f32 to vector<16x128xf32>
      %c0_19 = arith.constant 0 : index
      %c0_20 = arith.constant 0 : index
      %27 = vector.load %arg6[%c0_19, %c0_20] : memref<16x128xf32, #tpu.memory_space<vmem>>, vector<16x128xf32>
      tpu.vector_store %arg6[%c0_19, %c0_20], %26 {strides = array<i32>} : memref<16x128xf32, #tpu.memory_space<vmem>>, vector<16x128xf32>,
    } else {
    }
    %c0 = arith.constant 0 : index
    %c0_1 = arith.constant 0 : index
    %3 = vector.load %arg2[%c0, %c0_1] : memref<16x16xbf16, #tpu.memory_space<vmem>>, vector<16x16xbf16>
    %c0_2 = arith.constant 0 : index
    %c0_3 = arith.constant 0 : index
    %c0_4 = arith.constant 0 : index
    %4 = vector.load %arg3[%c0_2, %c0_3, %c0_4] : memref<2x16x128xbf16, #tpu.memory_space<vmem>>, vector<1x16x128xbf16>
    %5 = vector.shape_cast %4 : vector<1x16x128xbf16> to vector<16x128xbf16>
    %cst = arith.constant dense<0.000000e+00> : vector<16x128xf32>
    %6 = tpu.matmul %3, %5, %cst {dimension_numbers = #tpu.dot_dimension_numbers<[1], [0], [0], [1], [0, 0, 1, 1], [], []>} : vector<16x16xbf16>, vector<16x128xbf16>, vector<16x128xf32> -> vector<16x128xf32>
    %c1 = arith.constant 1 : index
    %c0_5 = arith.constant 0 : index
    %c0_6 = arith.constant 0 : index
    %7 = vector.load %arg3[%c1, %c0_5, %c0_6] : memref<2x16x128xbf16, #tpu.memory_space<vmem>>, vector<1x16x128xbf16>
    %8 = vector.shape_cast %7 : vector<1x16x128xbf16> to vector<16x128xbf16>
    %cst_7 = arith.constant dense<0.000000e+00> : vector<16x128xf32>
    %9 = tpu.matmul %3, %8, %cst_7 {dimension_numbers = #tpu.dot_dimension_numbers<[1], [0], [0], [1], [0, 0, 1, 1], [], []>} : vector<16x16xbf16>, vector<16x128xbf16>, vector<16x128xf32> -> vector<16x128xf32>
    %10 = arith.negf %6 : vector<16x128xf32>
    %11 = math.exp %10 : vector<16x128xf32>
    %cst_8 = arith.constant 1.000000e+00 : f32
    %12 = vector.broadcast %cst_8 : f32 to vector<16x128xf32>
    %13 = arith.addf %12, %11 : vector<16x128xf32>
    %14 = arith.divf %12, %13 : vector<16x128xf32>
    %15 = arith.mulf %6, %14 : vector<16x128xf32>
    %16 = arith.mulf %15, %9 : vector<16x128xf32>
    %c0_9 = arith.constant 0 : index
    %c0_10 = arith.constant 0 : index
    %17 = vector.load %arg6[%c0_9, %c0_10] : memref<16x128xf32, #tpu.memory_space<vmem>>, vector<16x128xf32>
    %18 = arith.truncf %16 : vector<16x128xf32> to vector<16x128xbf16>
    %c0_11 = arith.constant 0 : index
    %c0_12 = arith.constant 0 : index
    %19 = vector.load %arg4[%c0_11, %c0_12] : memref<128x128xbf16, #tpu.memory_space<vmem>>, vector<128x128xbf16>
    %cst_13 = arith.constant dense<0.000000e+00> : vector<16x128xf32>
    %20 = tpu.matmul %18, %19, %cst_13 {dimension_numbers = #tpu.dot_dimension_numbers<[1], [0], [0], [1], [0, 0, 1, 1], [], []>} : vector<16x128xbf16>, vector<128x128xbf16>, vector<16x128xf32> -> vector<16x128xf32>
    %21 = arith.addf %17, %20 : vector<16x128xf32>
    %c0_14 = arith.constant 0 : index
    %c0_15 = arith.constant 0 : index
    %22 = vector.load %arg6[%c0_14, %c0_15] : memref<16x128xf32, #tpu.memory_space<vmem>>, vector<16x128xf32>
    tpu.vector_store %arg6[%c0_14, %c0_15], %21 {strides = array<i32>} : memref<16x128xf32, #tpu.memory_space<vmem>>, vector<16x128xf32>,
    %c0_i32_16 = arith.constant 0 : i32
    %23 = arith.cmpi eq, %arg1, %c0_i32_16 : i32
    %24 = arith.extui %23 : i1 to i32
    %c0_i32_17 = arith.constant 0 : i32
    %25 = arith.cmpi ne, %24, %c0_i32_17 : i32
    scf.if %25 {
      %c0_18 = arith.constant 0 : index
      %c0_19 = arith.constant 0 : index
      %26 = vector.load %arg6[%c0_18, %c0_19] : memref<16x128xf32, #tpu.memory_space<vmem>>, vector<16x128xf32>
      %27 = arith.truncf %26 : vector<16x128xf32> to vector<16x128xbf16>
      %c0_20 = arith.constant 0 : index
      %c0_21 = arith.constant 0 : index
      %28 = vector.load %arg5[%c0_20, %c0_21] : memref<16x128xbf16, #tpu.memory_space<vmem>>, vector<16x128xbf16>
      tpu.vector_store %arg5[%c0_20, %c0_21], %27 {strides = array<i32>} : memref<16x128xbf16, #tpu.memory_space<vmem>>, vector<16x128xbf16>,
    } else {
    }
    return
  }
  func.func @transform_0(%arg0: i32, %arg1: i32) -> (i32, i32) {
    %c0_i32 = arith.constant 0 : i32
    %c0_i32_0 = arith.constant 0 : i32
    return %arg0, %c0_i32 : i32, i32
  }
  func.func @transform_1(%arg0: i32, %arg1: i32) -> (i32, i32, i32) {
    %c0_i32 = arith.constant 0 : i32
    %c0_i32_0 = arith.constant 0 : i32
    %c0_i32_1 = arith.constant 0 : i32
    return %c0_i32, %c0_i32_0, %arg1 : i32, i32, i32
  }
  func.func @transform_2(%arg0: i32, %arg1: i32) -> (i32, i32) {
    %c0_i32 = arith.constant 0 : i32
    %c0_i32_0 = arith.constant 0 : i32
    return %arg1, %c0_i32 : i32, i32
  }
  func.func @transform_3(%arg0: i32, %arg1: i32) -> (i32, i32) {
    %c0_i32 = arith.constant 0 : i32
    %c0_i32_0 = arith.constant 0 : i32
    return %arg0, %c0_i32 : i32, i32
  }
}

module attributes {stable_mosaic.version = 11 : i64} {
  func.func @_swiglu_kernel(%arg0: i32, %arg1: i32, %arg2: memref<16x128xbf16, #tpu.memory_space<vmem>>, %arg3: memref<2x128x128xbf16, #tpu.memory_space<vmem>>, %arg4: memref<128x128xbf16, #tpu.memory_space<vmem>>, %arg5: memref<16x128xbf16, #tpu.memory_space<vmem>>, %arg6: memref<16x128xf32, #tpu.memory_space<vmem>>) attributes {dimension_semantics = [#tpu.dimension_semantics<parallel>, #tpu.dimension_semantics<arbitrary>], iteration_bounds = array<i64: 1, 1>, scalar_prefetch = 0 : i64, scratch_operands = 1 : i64, tpu.core_type = #tpu.core_type<tc>, window_params = [{transform_indices = @transform_0, window_bounds = array<i64: 16, 128>}, {transform_indices = @transform_1, window_bounds = array<i64: 2, 128, 128>}, {transform_indices = @transform_2, window_bounds = array<i64: 128, 128>}, {transform_indices = @transform_3, window_bounds = array<i64: 16, 128>}]} {
    %c0_i32 = arith.constant 0 : i32
    %0 = arith.cmpi eq, %arg1, %c0_i32 : i32
    %1 = arith.extui %0 : i1 to i32
    %c0_i32_0 = arith.constant 0 : i32
    %2 = arith.cmpi ne, %1, %c0_i32_0 : i32
    scf.if %2 {
      %cst_18 = arith.constant 0.000000e+00 : f32
      %26 = vector.broadcast %cst_18 : f32 to vector<16x128xf32>
      %c0_19 = arith.constant 0 : index
      %c0_20 = arith.constant 0 : index
      %27 = vector.load %arg6[%c0_19, %c0_20] : memref<16x128xf32, #tpu.memory_space<vmem>>, vector<16x128xf32>
      tpu.vector_store %arg6[%c0_19, %c0_20], %26 {strides = array<i32>} : memref<16x128xf32, #tpu.memory_space<vmem>>, vector<16x128xf32>,
    } else {
    }
    %c0 = arith.constant 0 : index
    %c0_1 = arith.constant 0 : index
    %3 = vector.load %arg2[%c0, %c0_1] : memref<16x128xbf16, #tpu.memory_space<vmem>>, vector<16x128xbf16>
    %c0_2 = arith.constant 0 : index
    %c0_3 = arith.constant 0 : index
    %c0_4 = arith.constant 0 : index
    %4 = vector.load %arg3[%c0_2, %c0_3, %c0_4] : memref<2x128x128xbf16, #tpu.memory_space<vmem>>, vector<1x128x128xbf16>
    %5 = vector.shape_cast %4 : vector<1x128x128xbf16> to vector<128x128xbf16>
    %cst = arith.constant dense<0.000000e+00> : vector<16x128xf32>
    %6 = tpu.matmul %3, %5, %cst {dimension_numbers = #tpu.dot_dimension_numbers<[1], [0], [0], [1], [0, 0, 1, 1], [], []>} : vector<16x128xbf16>, vector<128x128xbf16>, vector<16x128xf32> -> vector<16x128xf32>
    %c1 = arith.constant 1 : index
    %c0_5 = arith.constant 0 : index
    %c0_6 = arith.constant 0 : index
    %7 = vector.load %arg3[%c1, %c0_5, %c0_6] : memref<2x128x128xbf16, #tpu.memory_space<vmem>>, vector<1x128x128xbf16>
    %8 = vector.shape_cast %7 : vector<1x128x128xbf16> to vector<128x128xbf16>
    %cst_7 = arith.constant dense<0.000000e+00> : vector<16x128xf32>
    %9 = tpu.matmul %3, %8, %cst_7 {dimension_numbers = #tpu.dot_dimension_numbers<[1], [0], [0], [1], [0, 0, 1, 1], [], []>} : vector<16x128xbf16>, vector<128x128xbf16>, vector<16x128xf32> -> vector<16x128xf32>
    %10 = arith.negf %6 : vector<16x128xf32>
    %11 = math.exp %10 : vector<16x128xf32>
    %cst_8 = arith.constant 1.000000e+00 : f32
    %12 = vector.broadcast %cst_8 : f32 to vector<16x128xf32>
    %13 = arith.addf %12, %11 : vector<16x128xf32>
    %14 = arith.divf %12, %13 : vector<16x128xf32>
    %15 = arith.mulf %6, %14 : vector<16x128xf32>
    %16 = arith.mulf %15, %9 : vector<16x128xf32>
    %c0_9 = arith.constant 0 : index
    %c0_10 = arith.constant 0 : index
    %17 = vector.load %arg6[%c0_9, %c0_10] : memref<16x128xf32, #tpu.memory_space<vmem>>, vector<16x128xf32>
    %18 = arith.truncf %16 : vector<16x128xf32> to vector<16x128xbf16>
    %c0_11 = arith.constant 0 : index
    %c0_12 = arith.constant 0 : index
    %19 = vector.load %arg4[%c0_11, %c0_12] : memref<128x128xbf16, #tpu.memory_space<vmem>>, vector<128x128xbf16>
    %cst_13 = arith.constant dense<0.000000e+00> : vector<16x128xf32>
    %20 = tpu.matmul %18, %19, %cst_13 {dimension_numbers = #tpu.dot_dimension_numbers<[1], [0], [0], [1], [0, 0, 1, 1], [], []>} : vector<16x128xbf16>, vector<128x128xbf16>, vector<16x128xf32> -> vector<16x128xf32>
    %21 = arith.addf %17, %20 : vector<16x128xf32>
    %c0_14 = arith.constant 0 : index
    %c0_15 = arith.constant 0 : index
    %22 = vector.load %arg6[%c0_14, %c0_15] : memref<16x128xf32, #tpu.memory_space<vmem>>, vector<16x128xf32>
    tpu.vector_store %arg6[%c0_14, %c0_15], %21 {strides = array<i32>} : memref<16x128xf32, #tpu.memory_space<vmem>>, vector<16x128xf32>,
    %c0_i32_16 = arith.constant 0 : i32
    %23 = arith.cmpi eq, %arg1, %c0_i32_16 : i32
    %24 = arith.extui %23 : i1 to i32
    %c0_i32_17 = arith.constant 0 : i32
    %25 = arith.cmpi ne, %24, %c0_i32_17 : i32
    scf.if %25 {
      %c0_18 = arith.constant 0 : index
      %c0_19 = arith.constant 0 : index
      %26 = vector.load %arg6[%c0_18, %c0_19] : memref<16x128xf32, #tpu.memory_space<vmem>>, vector<16x128xf32>
      %27 = arith.truncf %26 : vector<16x128xf32> to vector<16x128xbf16>
      %c0_20 = arith.constant 0 : index
      %c0_21 = arith.constant 0 : index
      %28 = vector.load %arg5[%c0_20, %c0_21] : memref<16x128xbf16, #tpu.memory_space<vmem>>, vector<16x128xbf16>
      tpu.vector_store %arg5[%c0_20, %c0_21], %27 {strides = array<i32>} : memref<16x128xbf16, #tpu.memory_space<vmem>>, vector<16x128xbf16>,
    } else {
    }
    return
  }
  func.func @transform_0(%arg0: i32, %arg1: i32) -> (i32, i32) {
    %c0_i32 = arith.constant 0 : i32
    %c0_i32_0 = arith.constant 0 : i32
    return %arg0, %c0_i32 : i32, i32
  }
  func.func @transform_1(%arg0: i32, %arg1: i32) -> (i32, i32, i32) {
    %c0_i32 = arith.constant 0 : i32
    %c0_i32_0 = arith.constant 0 : i32
    %c0_i32_1 = arith.constant 0 : i32
    return %c0_i32, %c0_i32_0, %arg1 : i32, i32, i32
  }
  func.func @transform_2(%arg0: i32, %arg1: i32) -> (i32, i32) {
    %c0_i32 = arith.constant 0 : i32
    %c0_i32_0 = arith.constant 0 : i32
    return %arg1, %c0_i32 : i32, i32
  }
  func.func @transform_3(%arg0: i32, %arg1: i32) -> (i32, i32) {
    %c0_i32 = arith.constant 0 : i32
    %c0_i32_0 = arith.constant 0 : i32
    return %arg0, %c0_i32 : i32, i32
  }
}

</mosaic_0001>

<bundles_post_ra>
// kernel: swiglu_mlp_forward.5
= control target key start
LH: loop header
LB: loop body
LE: loop exit
PB: predicated region body
PF: predicated region fallthrough
CT: control target
= control target key end

     0   :  { %v210_v0 = vmov 0.0   ;;  %vm211_vm0 = vmmov 0   ;;  %s268_s1 = inlined_call_operand.vmem [shape: bf16[128,128], index: 1, kind: input, shape index: {}]   ;;  %s269_s0 = inlined_call_operand.vmem [shape: bf16[16,128], index: 0, kind: input, shape index: {}]   ;;  %s270_s2 = inlined_call_operand.vmem [shape: f32[1,128], index: 2, kind: input, shape index: {}]   ;;  %s271_s3 = inlined_call_operand.vmem [shape: f32[16,128], index: 3, kind: output, shape index: {}]  }
   0x1   :  { %179 = vmatprep.subr.bf16.mxu0 %v210_v0  ;;  %v201_v1 = vld [vmem:[%s268_s1] sm:$0xff]   ;;  %195 = vmatprep.mubr.msk.bf16.mxu0 %vm211_vm0, %v210_v0  ;;  %v202_v2 = vld [vmem:[%s268_s1 + $0x8] sm:$0xff]   ;;  %v203_v3 = vld [vmem:[%s268_s1 + $0x10] sm:$0xff]  }
   0x2   :  { %180 = vmatpush3.bf16.msra.mxu0 %v201_v1  ;;  %v204_v4 = vld [vmem:[%s268_s1 + $0x18] sm:$0xff]   ;;  %v205_v5 = vld [vmem:[%s268_s1 + $0x20] sm:$0xff]   ;;  %v206_v6 = vld [vmem:[%s268_s1 + $0x28] sm:$0xff]  }
   0x3   :  { %181 = vmatprep.subr.bf16.mxu0 %v210_v0  ;;  %v207_v7 = vld [vmem:[%s268_s1 + $0x30] sm:$0xff]   ;;  %v208_v8 = vld [vmem:[%s268_s1 + $0x38] sm:$0xff]   ;;  %v209_v9 = vld [vmem:[%s269_s0] sm:$0xff]  }
   0x4   :  { %v169_v10 = vld [vmem:[%s270_s2] ss:$0 sm:$0xff] }
   0x6   :  { %182 = vmatpush3.bf16.msra.mxu0 %v202_v2 }
   0x7   :  { %183 = vmatprep.subr.bf16.mxu0 %v210_v0 }
   0xa   :  { %184 = vmatpush3.bf16.msra.mxu0 %v203_v3 }
   0xb   :  { %185 = vmatprep.subr.bf16.mxu0 %v210_v0 }
   0xe   :  { %186 = vmatpush3.bf16.msra.mxu0 %v204_v4 }
   0xf   :  { %187 = vmatprep.subr.bf16.mxu0 %v210_v0 }
  0x12   :  { %188 = vmatpush3.bf16.msra.mxu0 %v205_v5 }
  0x13   :  { %189 = vmatprep.subr.bf16.mxu0 %v210_v0 }
  0x16   :  { %190 = vmatpush3.bf16.msra.mxu0 %v206_v6 }
  0x17   :  { %191 = vmatprep.subr.bf16.mxu0 %v210_v0 }
  0x1a   :  { %192 = vmatpush3.bf16.msra.mxu0 %v207_v7 }
  0x1b   :  { %193 = vmatprep.subr.bf16.mxu0 %v210_v0 }
  0x1e   :  { %194 = vmatpush3.bf16.msra.mxu0 %v208_v8 }
  0x21   :  { %196 = vmatmul.mubr.bf16.vlgmr.msra.gmra.mrb[0].mxu0 %v209_v9 }
  0xf4   :  { %v129_v11 = vpop.f32.mrb[0].mxu0 }
  0xf5   :  { %v152_v12 = vadd.f32 %v169_v10, %v129_v11  ;;  %v197_v13 = vpop.f32.mrb[1].mxu0 }
  0xf6   :  { %v132_v14 = vpop.f32.mrb[2].mxu0 }
  0xf7   :  { %154 = vst [vmem:[%s271_s3] sm:$0xff] %v152_v12  ;;  %v153_v15 = vadd.f32 %v169_v10, %v132_v14  ;;  %v198_v16 = vpop.f32.mrb[3].mxu0 }
  0xf9   :  { %155 = vst [vmem:[%s271_s3 + $0x8] sm:$0xff] %v153_v15 }

// kernel: swiglu_mlp_forward.3
= control target key start
LH: loop header
LB: loop body
LE: loop exit
PB: predicated region body
PF: predicated region fallthrough
CT: control target
= control target key end

     0   :  { %8 = vsyncpa [#allocation4], 0  ;;  %s506_s0 = inlined_call_operand.vmem [shape: bf16[16,16], index: 0, kind: input, shape index: {}]   ;;  %s507_s1 = inlined_call_operand.hbm [shape: bf16[2,16,128], index: 1, kind: input, shape index: {}]   ;;  %s508_s2 = inlined_call_operand.hbm [shape: bf16[128,128], index: 2, kind: input, shape index: {}]   ;;  %s509_s3 = inlined_call_operand.vmem [shape: bf16[16,128], index: 3, kind: output, shape index: {}]  }
   0x1   :  { %9 = vsyncpa [#allocation6], 0  ;;  %s450_s12 = smov [#allocation3]   ;;  %s402_s16 = scalar_lea.hbm %s507_s1, 256 }
   0x2   :  { %s17_s13 = sshll.u32 %s450_s12, 4  ;;  %p403_p0 = scmp.ne.s32.totalorder %s507_s1, %s402_s16  ;;  %s18_s13 = int_to_ptr.vmem [resolvable:$true] %s17_s13 }
   0x3   :  { %p406_p1 = scmp.lt.u32.totalorder %s402_s16, %s507_s1 }
   0x5   :  { %p408_p2 = pnand %p406_p1, %p403_p0 }
   0x7   :  { %411 = shalt.err (!%p408_p2)
}
   0x8   :  { %s412_s21 = scalar_lea.vmem %s18_s13, 256  ;;  %p417_p4 = scmp.lt.s32.totalorder %s18_s13, %s18_s13 }
   0x9   :  { %p413_p3 = scmp.ne.s32.totalorder %s18_s13, %s412_s21  ;;  %p418_p5 = scmp.lt.s32.totalorder %s412_s21, %s412_s21 }
   0xb   :  { %p419_p6 = por %p418_p5, %p417_p4 }
   0xd   :  { %p420_p7 = pnand %p419_p6, %p413_p3 }
   0xf   :  { %423 = shalt.err (!%p420_p7)
}
  0x10   :  { %s451_s22 = smov 64   ;;  %s452_s23 = smov 4  }
  0x11   :  { %23 = dma.hbm_to_vmem [thread:$0]  %s507_s1, 256, %s18_s13, [#allocation4], %s451_s22, %s451_s22, %s452_s23  }
  0x12   :  { %s453_s26 = smov [#allocation5]   ;;  %s424_s30 = scalar_lea.hbm %s508_s2, 1024 }
  0x13   :  { %s29_s27 = sshll.u32 %s453_s26, 4  ;;  %p425_p8 = scmp.ne.s32.totalorder %s508_s2, %s424_s30  ;;  %s30_s27 = int_to_ptr.vmem [resolvable:$true] %s29_s27 }
  0x14   :  { %p428_p9 = scmp.lt.u32.totalorder %s424_s30, %s508_s2 }
  0x16   :  { %p430_p10 = pnand %p428_p9, %p425_p8 }
  0x18   :  { %433 = shalt.err (!%p430_p10)
}
  0x19   :  { %s434_s8 = scalar_lea.vmem %s30_s27, 1024  ;;  %p439_p12 = scmp.lt.s32.totalorder %s30_s27, %s30_s27 }
  0x1a   :  { %p435_p11 = scmp.ne.s32.totalorder %s30_s27, %s434_s8  ;;  %p440_p13 = scmp.lt.s32.totalorder %s434_s8, %s434_s8 }
  0x1c   :  { %p441_p0 = por %p440_p13, %p439_p12 }
  0x1e   :  { %p442_p1 = pnand %p441_p0, %p435_p11 }
  0x20   :  { %445 = shalt.err (!%p442_p1)
}
  0x21   :  { %35 = dma.hbm_to_vmem [thread:$0]  %s508_s2, 1024, %s30_s27, [#allocation6], %s451_s22, %s451_s22, %s452_s23  }
  0x22   :  { %446 = dma.done.wait [#allocation4], 256  }
  0x23   :  { %447 = vsyncadd [#allocation4], 4294967040 }
  0x24   :  { %448 = dma.done.wait [#allocation6], 1024  }
  0x25   :  { %449 = vsyncadd [#allocation6], 4294966272  ;;  %v454_v0 = vmov 0.0   ;;  %vm455_vm0 = vmmov 0   ;;  %v383_v1 = vld [vmem:[#allocation3] sm:$0xff]   ;;  %vm64_vm1 = vcmask 130048  }
  0x26   :  { %345 = vmatprep.subr.bf16.mxu1 %v454_v0  ;;  %347 = vmatprep.mubr.msk.bf16.mxu1 %vm455_vm0, %v454_v0  ;;  %v384_v2 = vld [vmem:[%s506_s0] sm:$0xff]   ;;  %v385_v3 = vld [vmem:[#allocation3 + $0x8] sm:$0xff]   ;;  %v386_v4 = vld [vmem:[#allocation5] sm:$0xff]  }
  0x27   :  { %357 = vmatprep.subr.bf16.mxu0 %v454_v0  ;;  %373 = vmatprep.mubr.msk.bf16.mxu0 %vm455_vm0, %v454_v0  ;;  %v387_v5 = vld [vmem:[#allocation5 + $0x8] sm:$0xff]   ;;  %v388_v6 = vld [vmem:[#allocation5 + $0x10] sm:$0xff]   ;;  %v389_v7 = vld [vmem:[#allocation5 + $0x18] sm:$0xff]  }
  0x28   :  { %346 = vmatpush3.bf16.msra.mxu1 %v383_v1  ;;  %358 = vmatpush3.bf16.msra.mxu0 %v386_v4  ;;  %v390_v8 = vld [vmem:[#allocation5 + $0x20] sm:$0xff]   ;;  %v391_v9 = vld [vmem:[#allocation5 + $0x28] sm:$0xff]   ;;  %v392_v10 = vld [vmem:[#allocation5 + $0x30] sm:$0xff]  }
  0x29   :  { %351 = vmatprep.subr.bf16.mxu1 %v454_v0  ;;  %359 = vmatprep.subr.bf16.mxu0 %v454_v0  ;;  %v393_v11 = vld [vmem:[#allocation5 + $0x38] sm:$0xff]  }
  0x2b   :  { %348 = vmatmul.mubr.msk.bf16.vlgmr.msra.gmra.mrb[0].mxu1 %vm64_vm1, %v384_v2 }
  0x2c   :  { %352 = vmatpush3.bf16.msra.mxu1 %v385_v3  ;;  %353 = vmatprep.mubr.msk.bf16.mxu1 %vm455_vm0, %v454_v0 }
  0x2d   :  { %360 = vmatpush3.bf16.msra.mxu0 %v387_v5 }
  0x2e   :  { %361 = vmatprep.subr.bf16.mxu0 %v454_v0 }
  0x31   :  { %362 = vmatpush3.bf16.msra.mxu0 %v388_v6 }
  0x32   :  { %363 = vmatprep.subr.bf16.mxu0 %v454_v0 }
  0x33   :  { %354 = vmatmul.mubr.msk.bf16.vlgmr.msra.gmra.mrb[4].mxu1 %vm64_vm1, %v384_v2 }
  0x35   :  { %364 = vmatpush3.bf16.msra.mxu0 %v389_v7 }
  0x36   :  { %365 = vmatprep.subr.bf16.mxu0 %v454_v0 }
  0x39   :  { %366 = vmatpush3.bf16.msra.mxu0 %v390_v8 }
  0x3a   :  { %367 = vmatprep.subr.bf16.mxu0 %v454_v0 }
  0x3d   :  { %368 = vmatpush3.bf16.msra.mxu0 %v391_v9 }
  0x3e   :  { %369 = vmatprep.subr.bf16.mxu0 %v454_v0 }
  0x41   :  { %370 = vmatpush3.bf16.msra.mxu0 %v392_v10 }
  0x42   :  { %371 = vmatprep.subr.bf16.mxu0 %v454_v0 }
  0x45   :  { %372 = vmatpush3.bf16.msra.mxu0 %v393_v11 }
  0xfe   :  { %v102_v12 = vpop.f32.mrb[0].mxu1 }
  0xff   :  { %v313_v13 = vmul.f32 -1.442695, %v102_v12  ;;  %v349_v14 = vpop.f32.mrb[1].mxu1 }
 0x100   :  { %v105_v15 = vpop.f32.mrb[2].mxu1 }
 0x101   :  { %394 = vpow2.f32 %v313_v13  ;;  %v314_v16 = vmul.f32 -1.442695, %v105_v15  ;;  %v350_v17 = vpop.f32.mrb[3].mxu1 }
 0x103   :  { %396 = vpow2.f32 %v314_v16 }
 0x106   :  { %v152_v18 = vpop.f32.mrb[4].mxu1 }
 0x107   :  { %v355_v19 = vpop.f32.mrb[5].mxu1 }
 0x108   :  { %v155_v20 = vpop.f32.mrb[6].mxu1 }
 0x109   :  { %v356_v21 = vpop.f32.mrb[7].mxu1 }
 0x10b   :  { %v395_v22 = vpop.eup %394 }
 0x10c   :  { %v165_v23 = vadd.f32 1.0, %v395_v22 }
 0x10d   :  { %v397_v24 = vpop.eup %396 }
 0x10e   :  { %398 = vrcp.f32 %v165_v23  ;;  %v166_v25 = vadd.f32 1.0, %v397_v24 }
 0x110   :  { %400 = vrcp.f32 %v166_v25 }
 0x118   :  { %v399_v26 = vpop.eup %398 }
 0x119   :  { %v171_v27 = vmul.f32 %v399_v26, %v102_v12 }
 0x11a   :  { %v401_v28 = vpop.eup %400 }
 0x11b   :  { %v172_v29 = vmul.f32 %v401_v28, %v105_v15  ;;  %v173_v30 = vmul.f32 %v171_v27, %v152_v18 }
 0x11d   :  { %v174_v31 = vmul.f32 %v172_v29, %v155_v20 }
 0x11f   :  { %v177_v32 = vpack.c.bf16 %v174_v31, %v173_v30 }
 0x121   :  { %374 = vmatmul.mubr.bf16.vlgmr.msra.gmra.mrb[0].mxu0 %v177_v32 }
 0x1f4   :  { %v276_v33 = vpop.f32.mrb[0].mxu0 }
 0x1f5   :  { %v375_v34 = vpop.f32.mrb[1].mxu0 }
 0x1f6   :  { %v279_v35 = vpop.f32.mrb[2].mxu0 }
 0x1f7   :  { %v330_v36 = vpack.c.bf16 %v279_v35, %v276_v33  ;;  %v376_v37 = vpop.f32.mrb[3].mxu0 }
 0x1f9   :  { %331 = vst [vmem:[%s509_s3] sm:$0xff] %v330_v36  }
 0x1fa   :  { %306 = vsyncpa [#allocation4], 1 }
 0x1fb   :  { %307 = vsyncpa [#allocation6], 1 }

// kernel: swiglu_mlp_forward.4
= control target key start
LH: loop header
LB: loop body
LE: loop exit
PB: predicated region body
PF: predicated region fallthrough
CT: control target
= control target key end

     0   :  { %8 = vsyncpa [#allocation4], 0  ;;  %s603_s12 = smov [#allocation3]   ;;  %s724_s0 = inlined_call_operand.vmem [shape: bf16[16,128], index: 0, kind: input, shape index: {}]   ;;  %s725_s1 = inlined_call_operand.vmem [shape: bf16[2,128,128], index: 1, kind: input, shape index: {}]   ;;  %s726_s2 = inlined_call_operand.hbm [shape: bf16[128,128], index: 2, kind: input, shape index: {}]   ;;  %s727_s3 = inlined_call_operand.vmem [shape: bf16[16,128], index: 3, kind: output, shape index: {}]  }
   0x1   :  { %s18_s13 = sshll.u32 %s603_s12, 4  ;;  %s579_s16 = scalar_lea.hbm %s726_s2, 1024  ;;  %s19_s13 = int_to_ptr.vmem [resolvable:$true] %s18_s13 }
   0x2   :  { %p580_p0 = scmp.ne.s32.totalorder %s726_s2, %s579_s16  ;;  %p583_p1 = scmp.lt.u32.totalorder %s579_s16, %s726_s2 }
   0x4   :  { %p585_p2 = pnand %p583_p1, %p580_p0 }
   0x6   :  { %588 = shalt.err (!%p585_p2)
}
   0x7   :  { %s589_s21 = scalar_lea.vmem %s19_s13, 1024  ;;  %p594_p4 = scmp.lt.s32.totalorder %s19_s13, %s19_s13 }
   0x8   :  { %p590_p3 = scmp.ne.s32.totalorder %s19_s13, %s589_s21  ;;  %p595_p5 = scmp.lt.s32.totalorder %s589_s21, %s589_s21 }
   0xa   :  { %p596_p6 = por %p595_p5, %p594_p4 }
   0xc   :  { %p597_p7 = pnand %p596_p6, %p590_p3 }
   0xe   :  { %600 = shalt.err (!%p597_p7)
}
   0xf   :  { %s604_s22 = smov 64   ;;  %s605_s23 = smov 4  }
  0x10   :  { %24 = dma.hbm_to_vmem [thread:$0]  %s726_s2, 1024, %s19_s13, [#allocation4], %s604_s22, %s604_s22, %s605_s23  }
  0x11   :  { %601 = dma.done.wait [#allocation4], 1024  }
  0x12   :  { %602 = vsyncadd [#allocation4], 4294966272  ;;  %v606_v0 = vmov 0.0   ;;  %vm607_vm0 = vmmov 0   ;;  %v546_v1 = vld [vmem:[%s725_s1] sm:$0xff]   ;;  %v547_v2 = vld [vmem:[%s725_s1 + $0x8] sm:$0xff]  }
  0x13   :  { %481 = vmatprep.subr.bf16.mxu0 %v606_v0  ;;  %501 = vmatprep.subr.bf16.mxu1 %v606_v0  ;;  %v548_v3 = vld [vmem:[%s725_s1 + $0x10] sm:$0xff]   ;;  %v553_v4 = vld [vmem:[%s725_s1 + $0x40] sm:$0xff]   ;;  %v555_v5 = vld [vmem:[%s725_s1 + $0x48] sm:$0xff]  }
  0x14   :  { %497 = vmatprep.mubr.msk.bf16.mxu0 %vm607_vm0, %v606_v0  ;;  %517 = vmatprep.mubr.msk.bf16.mxu1 %vm607_vm0, %v606_v0  ;;  %v549_v6 = vld [vmem:[%s725_s1 + $0x18] sm:$0xff]   ;;  %v557_v7 = vld [vmem:[%s725_s1 + $0x50] sm:$0xff]   ;;  %v550_v8 = vld [vmem:[%s725_s1 + $0x20] sm:$0xff]  }
  0x15   :  { %482 = vmatpush3.bf16.msra.mxu0 %v546_v1  ;;  %502 = vmatpush3.bf16.msra.mxu1 %v553_v4  ;;  %v551_v9 = vld [vmem:[%s725_s1 + $0x28] sm:$0xff]   ;;  %v558_v10 = vld [vmem:[%s725_s1 + $0x58] sm:$0xff]   ;;  %v559_v11 = vld [vmem:[%s725_s1 + $0x60] sm:$0xff]  }
  0x16   :  { %483 = vmatprep.subr.bf16.mxu0 %v606_v0  ;;  %503 = vmatprep.subr.bf16.mxu1 %v606_v0  ;;  %v552_v12 = vld [vmem:[%s725_s1 + $0x30] sm:$0xff]   ;;  %v560_v13 = vld [vmem:[%s725_s1 + $0x68] sm:$0xff]   ;;  %v554_v14 = vld [vmem:[%s725_s1 + $0x38] sm:$0xff]  }
  0x17   :  { %v556_v15 = vld [vmem:[%s724_s0] sm:$0xff]   ;;  %v561_v16 = vld [vmem:[%s725_s1 + $0x70] sm:$0xff]   ;;  %v562_v17 = vld [vmem:[%s725_s1 + $0x78] sm:$0xff]  }
  0x18   :  { %v563_v18 = vld [vmem:[#allocation3] sm:$0xff]   ;;  %v564_v19 = vld [vmem:[#allocation3 + $0x8] sm:$0xff]   ;;  %v565_v20 = vld [vmem:[#allocation3 + $0x10] sm:$0xff]  }
  0x19   :  { %484 = vmatpush3.bf16.msra.mxu0 %v547_v2  ;;  %504 = vmatpush3.bf16.msra.mxu1 %v555_v5  ;;  %v566_v21 = vld [vmem:[#allocation3 + $0x18] sm:$0xff]   ;;  %v567_v22 = vld [vmem:[#allocation3 + $0x20] sm:$0xff]   ;;  %v568_v23 = vld [vmem:[#allocation3 + $0x28] sm:$0xff]  }
  0x1a   :  { %485 = vmatprep.subr.bf16.mxu0 %v606_v0  ;;  %505 = vmatprep.subr.bf16.mxu1 %v606_v0  ;;  %v569_v24 = vld [vmem:[#allocation3 + $0x30] sm:$0xff]   ;;  %v570_v25 = vld [vmem:[#allocation3 + $0x38] sm:$0xff]  }
  0x1d   :  { %486 = vmatpush3.bf16.msra.mxu0 %v548_v3  ;;  %506 = vmatpush3.bf16.msra.mxu1 %v557_v7 }
  0x1e   :  { %487 = vmatprep.subr.bf16.mxu0 %v606_v0  ;;  %507 = vmatprep.subr.bf16.mxu1 %v606_v0 }
  0x21   :  { %488 = vmatpush3.bf16.msra.mxu0 %v549_v6  ;;  %508 = vmatpush3.bf16.msra.mxu1 %v558_v10 }
  0x22   :  { %489 = vmatprep.subr.bf16.mxu0 %v606_v0  ;;  %509 = vmatprep.subr.bf16.mxu1 %v606_v0 }
  0x25   :  { %490 = vmatpush3.bf16.msra.mxu0 %v550_v8  ;;  %510 = vmatpush3.bf16.msra.mxu1 %v559_v11 }
  0x26   :  { %491 = vmatprep.subr.bf16.mxu0 %v606_v0  ;;  %511 = vmatprep.subr.bf16.mxu1 %v606_v0 }
  0x29   :  { %492 = vmatpush3.bf16.msra.mxu0 %v551_v9  ;;  %512 = vmatpush3.bf16.msra.mxu1 %v560_v13 }
  0x2a   :  { %493 = vmatprep.subr.bf16.mxu0 %v606_v0  ;;  %513 = vmatprep.subr.bf16.mxu1 %v606_v0 }
  0x2d   :  { %494 = vmatpush3.bf16.msra.mxu0 %v552_v12  ;;  %514 = vmatpush3.bf16.msra.mxu1 %v561_v16 }
  0x2e   :  { %495 = vmatprep.subr.bf16.mxu0 %v606_v0  ;;  %515 = vmatprep.subr.bf16.mxu1 %v606_v0 }
  0x31   :  { %496 = vmatpush3.bf16.msra.mxu0 %v554_v14  ;;  %516 = vmatpush3.bf16.msra.mxu1 %v562_v17 }
  0x32   :  { %521 = vmatprep.subr.bf16.mxu0 %v606_v0 }
  0x34   :  { %498 = vmatmul.mubr.bf16.vlgmr.msra.gmra.mrb[0].mxu0 %v556_v15  ;;  %518 = vmatmul.mubr.bf16.vlgmr.msra.gmra.mrb[0].mxu1 %v556_v15 }
  0x35   :  { %537 = vmatprep.mubr.msk.bf16.mxu0 %vm607_vm0, %v606_v0  ;;  %522 = vmatpush3.bf16.msra.mxu0 %v563_v18 }
  0x36   :  { %523 = vmatprep.subr.bf16.mxu0 %v606_v0 }
  0x39   :  { %524 = vmatpush3.bf16.msra.mxu0 %v564_v19 }
  0x3a   :  { %525 = vmatprep.subr.bf16.mxu0 %v606_v0 }
  0x3d   :  { %526 = vmatpush3.bf16.msra.mxu0 %v565_v20 }
  0x3e   :  { %527 = vmatprep.subr.bf16.mxu0 %v606_v0 }
  0x41   :  { %528 = vmatpush3.bf16.msra.mxu0 %v566_v21 }
  0x42   :  { %529 = vmatprep.subr.bf16.mxu0 %v606_v0 }
  0x45   :  { %530 = vmatpush3.bf16.msra.mxu0 %v567_v22 }
  0x46   :  { %531 = vmatprep.subr.bf16.mxu0 %v606_v0 }
  0x49   :  { %532 = vmatpush3.bf16.msra.mxu0 %v568_v23 }
  0x4a   :  { %533 = vmatprep.subr.bf16.mxu0 %v606_v0 }
  0x4d   :  { %534 = vmatpush3.bf16.msra.mxu0 %v569_v24 }
  0x4e   :  { %535 = vmatprep.subr.bf16.mxu0 %v606_v0 }
  0x51   :  { %536 = vmatpush3.bf16.msra.mxu0 %v570_v25 }
 0x107   :  { %v141_v26 = vpop.f32.mrb[0].mxu0  ;;  %v247_v32 = vpop.f32.mrb[0].mxu1 }
 0x108   :  { %v435_v27 = vmul.f32 -1.442695, %v141_v26  ;;  %v499_v28 = vpop.f32.mrb[1].mxu0  ;;  %v519_v33 = vpop.f32.mrb[1].mxu1 }
 0x109   :  { %v144_v29 = vpop.f32.mrb[2].mxu0  ;;  %v250_v34 = vpop.f32.mrb[2].mxu1 }
 0x10a   :  { %571 = vpow2.f32 %v435_v27  ;;  %v436_v30 = vmul.f32 -1.442695, %v144_v29  ;;  %v500_v31 = vpop.f32.mrb[3].mxu0  ;;  %v520_v35 = vpop.f32.mrb[3].mxu1 }
 0x10c   :  { %573 = vpow2.f32 %v436_v30 }
 0x114   :  { %v572_v36 = vpop.eup %571 }
 0x115   :  { %v260_v37 = vadd.f32 1.0, %v572_v36 }
 0x116   :  { %v574_v38 = vpop.eup %573 }
 0x117   :  { %575 = vrcp.f32 %v260_v37  ;;  %v261_v39 = vadd.f32 1.0, %v574_v38 }
 0x119   :  { %577 = vrcp.f32 %v261_v39 }
 0x121   :  { %v576_v40 = vpop.eup %575 }
 0x122   :  { %v266_v41 = vmul.f32 %v576_v40, %v141_v26 }
 0x123   :  { %v578_v42 = vpop.eup %577 }
 0x124   :  { %v267_v43 = vmul.f32 %v578_v42, %v144_v29  ;;  %v268_v44 = vmul.f32 %v266_v41, %v247_v32 }
 0x126   :  { %v269_v45 = vmul.f32 %v267_v43, %v250_v34 }
 0x128   :  { %v272_v46 = vpack.c.bf16 %v269_v45, %v268_v44 }
 0x12a   :  { %538 = vmatmul.mubr.bf16.vlgmr.msra.gmra.mrb[4].mxu0 %v272_v46 }
 0x1fd   :  { %v371_v47 = vpop.f32.mrb[4].mxu0 }
 0x1fe   :  { %v539_v48 = vpop.f32.mrb[5].mxu0 }
 0x1ff   :  { %v374_v49 = vpop.f32.mrb[6].mxu0 }
 0x200   :  { %v452_v50 = vpack.c.bf16 %v374_v49, %v371_v47  ;;  %v540_v51 = vpop.f32.mrb[7].mxu0 }
 0x202   :  { %453 = vst [vmem:[%s727_s3] sm:$0xff] %v452_v50  }
 0x203   :  { %401 = vsyncpa [#allocation4], 1 }

</bundles_post_ra>
